<compile_context>
chip_gen: v5e
topology: v5e:2x2
jax: 0.10.0
libtpu: 0.0.40
codegen_flags: <defaults>
</compile_context>

<pallas_src>
import jax
import jax.numpy as jnp
import numpy as np
from jax.experimental import pallas as pl
from jax.experimental.pallas import tpu as pltpu

INV_SCALE_FACTOR = 30.0
DROPOUT_P = 0.1
# keep iff bits >= thresh  =>  P(keep) = 1 - DROPOUT_P (exact to 2^-32)
_DROP_THRESH = np.uint32(int(round(DROPOUT_P * (1 << 32))))


def sdpa_dropout_kernel(q_ref, kt_ref, vt_ref, bias_ref, bits_ref, o_ref):
    """Single-tile fused attention.

    q_ref   : (R, D)  queries, R = B*H*Lq
    kt_ref  : (D, C)  keys, transposed, C = B*H*Lk (lane-dense key axis)
    vt_ref  : (D, C)  values, transposed
    bias_ref: (R, C)  additive block-diagonal mask (0 same head, -1e30 else)
    bits_ref: (R, C)  uint32 random bits for dropout
    o_ref   : (R, D)  output
    """
    d_dim = q_ref.shape[1]

    # Fold the 1/inv_scale_factor into the small query operand (R*D elements)
    # instead of scaling the (R, C) score tile.
    q = q_ref[...] * jnp.float32(1.0 / INV_SCALE_FACTOR)
    kt = kt_ref[...]

    # D=2 contraction unrolled on the VPU (broadcast multiply-add); no MXU.
    # Start from the bias so the cross-head mask comes for free with the FMAs.
    s = bias_ref[...]
    for d in range(d_dim):
        s = s + q[:, d:d + 1] * kt[d:d + 1, :]

    # Numerically stable softmax over the key axis.
    m = jnp.max(s, axis=-1, keepdims=True)
    e = jnp.exp(s - m)
    denom = jnp.sum(e, axis=-1, keepdims=True)
    # Fold the inverted-dropout 1/(1-p) scale into the normalization.
    p = e * (1.0 / (denom * jnp.float32(1.0 - DROPOUT_P)))

    # Dropout keep-test directly on the uint32 bits: one integer compare.
    keep = bits_ref[...] >= jnp.uint32(_DROP_THRESH)
    p = jnp.where(keep, p, 0.0)

    # out = probs @ value: with D=2 this is two lane-axis reductions (VPU/XLU),
    # cheaper than an MXU matmul with N=2 at these shapes.
    vt = vt_ref[...]
    cols = [jnp.sum(p * vt[d:d + 1, :], axis=-1, keepdims=True)
            for d in range(d_dim)]
    o_ref[...] = jnp.concatenate(cols, axis=-1)


def sdpa_dropout(query, key, value, seed=0):
    """query: (B,H,Lq,D), key/value: (B,H,Lk,D) -> (B,H,Lq,D) float32."""
    B, H, Lq, D = query.shape
    _, _, Lk, _ = key.shape
    rows = B * H * Lq
    cols = B * H * Lk

    # Flatten heads into a single 2D problem; keep K/V transposed so the long
    # (key) axis is lane-dense inside the kernel.
    q2 = query.reshape(rows, D).astype(jnp.float32)
    kt = key.reshape(cols, D).astype(jnp.float32).T
    vt = value.reshape(cols, D).astype(jnp.float32).T

    # Block-diagonal additive bias: 0 within a head, -1e30 across heads, so
    # cross-head probabilities are exactly 0 after softmax and the flattened
    # 2D formulation matches the batched per-head attention.
    row_head = np.arange(rows) // Lq
    col_head = np.arange(cols) // Lk
    bias = jnp.asarray(
        np.where(row_head[:, None] == col_head[None, :], 0.0, -1e30),
        dtype=jnp.float32)

    # Dropout random bits from jax.random (portable: works compiled on TPU and
    # under the Pallas interpreter; the TPU HW PRNG is not).
    bits = jax.random.bits(jax.random.PRNGKey(seed), (rows, cols),
                           dtype=jnp.uint32)

    vmem = pl.BlockSpec(memory_space=pltpu.MemorySpace.VMEM)
    out2 = pl.pallas_call(
        sdpa_dropout_kernel,
        out_shape=jax.ShapeDtypeStruct((rows, D), jnp.float32),
        in_specs=[vmem, vmem, vmem, vmem, vmem],
        out_specs=vmem,
    )(q2, kt, vt, bias, bits)

    return out2.reshape(B, H, Lq, D)


if __name__ == "__main__":
    # Deterministic inputs matching the module's __init__ shapes:
    #   query: (1, 3, 10, 2), key: (1, 3, 20, 2), value: (1, 3, 20, 2)
    root = jax.random.PRNGKey(0)
    kq, kk, kv = jax.random.split(root, 3)
    query = jax.random.normal(kq, (1, 3, 10, 2), dtype=jnp.float32)
    key = jax.random.normal(kk, (1, 3, 20, 2), dtype=jnp.float32)
    value = jax.random.normal(kv, (1, 3, 20, 2), dtype=jnp.float32)

    out = sdpa_dropout(query, key, value, seed=0)
    jax.block_until_ready(out)
    assert out.shape == (1, 3, 10, 2)
    print("KERNEL_OK")
</pallas_src>

<mosaic_0001>
module attributes {stable_mosaic.version = 11 : i64} {
  func.func @sdpa_dropout_kernel(%arg0: memref<30x2xf32, #tpu.memory_space<vmem>>, %arg1: memref<2x60xf32, #tpu.memory_space<vmem>>, %arg2: memref<2x60xf32, #tpu.memory_space<vmem>>, %arg3: memref<30x60xf32, #tpu.memory_space<vmem>>, %arg4: memref<30x60xi32, #tpu.memory_space<vmem>>, %arg5: memref<30x2xf32, #tpu.memory_space<vmem>>) attributes {dimension_semantics = [], scalar_prefetch = 0 : i64, scratch_operands = 0 : i64, tpu.core_type = #tpu.core_type<tc>} {
    %c0 = arith.constant 0 : index
    %c0_0 = arith.constant 0 : index
    %0 = vector.load %arg0[%c0, %c0_0] : memref<30x2xf32, #tpu.memory_space<vmem>>, vector<30x2xf32>
    %cst = arith.constant 0.0333333351 : f32
    %1 = vector.broadcast %cst : f32 to vector<30x2xf32>
    %2 = arith.mulf %0, %1 : vector<30x2xf32>
    %c0_1 = arith.constant 0 : index
    %c0_2 = arith.constant 0 : index
    %3 = vector.load %arg1[%c0_1, %c0_2] : memref<2x60xf32, #tpu.memory_space<vmem>>, vector<2x60xf32>
    %c0_3 = arith.constant 0 : index
    %c0_4 = arith.constant 0 : index
    %4 = vector.load %arg3[%c0_3, %c0_4] : memref<30x60xf32, #tpu.memory_space<vmem>>, vector<30x60xf32>
    %5 = vector.extract_strided_slice %2 {offsets = [0, 0], sizes = [30, 1], strides = [1, 1]} : vector<30x2xf32> to vector<30x1xf32>
    %6 = vector.extract_strided_slice %3 {offsets = [0, 0], sizes = [1, 60], strides = [1, 1]} : vector<2x60xf32> to vector<1x60xf32>
    %7 = vector.broadcast %5 : vector<30x1xf32> to vector<30x60xf32>
    %8 = vector.broadcast %6 : vector<1x60xf32> to vector<30x60xf32>
    %9 = arith.mulf %7, %8 : vector<30x60xf32>
    %10 = arith.addf %4, %9 : vector<30x60xf32>
    %11 = vector.extract_strided_slice %2 {offsets = [0, 1], sizes = [30, 1], strides = [1, 1]} : vector<30x2xf32> to vector<30x1xf32>
    %12 = vector.extract_strided_slice %3 {offsets = [1, 0], sizes = [1, 60], strides = [1, 1]} : vector<2x60xf32> to vector<1x60xf32>
    %13 = vector.broadcast %11 : vector<30x1xf32> to vector<30x60xf32>
    %14 = vector.broadcast %12 : vector<1x60xf32> to vector<30x60xf32>
    %15 = arith.mulf %13, %14 : vector<30x60xf32>
    %16 = arith.addf %10, %15 : vector<30x60xf32>
    %cst_5 = arith.constant dense<0xFF800000> : vector<30xf32>
    %17 = vector.multi_reduction <maximumf>, %16, %cst_5 [1] : vector<30x60xf32> to vector<30xf32>
    %18 = vector.shape_cast %17 : vector<30xf32> to vector<30x1xf32>
    %19 = vector.broadcast %18 : vector<30x1xf32> to vector<30x60xf32>
    %20 = arith.subf %16, %19 : vector<30x60xf32>
    %21 = math.exp %20 : vector<30x60xf32>
    %cst_6 = arith.constant dense<0.000000e+00> : vector<30xf32>
    %22 = vector.multi_reduction <add>, %21, %cst_6 [1] : vector<30x60xf32> to vector<30xf32>
    %23 = vector.shape_cast %22 : vector<30xf32> to vector<30x1xf32>
    %cst_7 = arith.constant 0.899999976 : f32
    %24 = vector.broadcast %cst_7 : f32 to vector<30x1xf32>
    %25 = arith.mulf %23, %24 : vector<30x1xf32>
    %cst_8 = arith.constant 1.000000e+00 : f32
    %26 = vector.broadcast %cst_8 : f32 to vector<30x1xf32>
    %27 = arith.divf %26, %25 : vector<30x1xf32>
    %28 = vector.broadcast %27 : vector<30x1xf32> to vector<30x60xf32>
    %29 = arith.mulf %21, %28 : vector<30x60xf32>
    %c0_9 = arith.constant 0 : index
    %c0_10 = arith.constant 0 : index
    %30 = vector.load %arg4[%c0_9, %c0_10] : memref<30x60xi32, #tpu.memory_space<vmem>>, vector<30x60xi32>
    %c429496730_i32 = arith.constant 429496730 : i32
    %31 = vector.broadcast %c429496730_i32 : i32 to vector<30x60xi32>
    %32 = arith.cmpi uge, %30, %31 : vector<30x60xi32>
    %cst_11 = arith.constant 0.000000e+00 : f32
    %33 = vector.broadcast %cst_11 : f32 to vector<30x60xf32>
    %34 = arith.select %32, %29, %33 : vector<30x60xi1>, vector<30x60xf32>
    %c0_12 = arith.constant 0 : index
    %c0_13 = arith.constant 0 : index
    %35 = vector.load %arg2[%c0_12, %c0_13] : memref<2x60xf32, #tpu.memory_space<vmem>>, vector<2x60xf32>
    %36 = vector.extract_strided_slice %35 {offsets = [0, 0], sizes = [1, 60], strides = [1, 1]} : vector<2x60xf32> to vector<1x60xf32>
    %37 = vector.broadcast %36 : vector<1x60xf32> to vector<30x60xf32>
    %38 = arith.mulf %34, %37 : vector<30x60xf32>
    %cst_14 = arith.constant dense<0.000000e+00> : vector<30xf32>
    %39 = vector.multi_reduction <add>, %38, %cst_14 [1] : vector<30x60xf32> to vector<30xf32>
    %40 = vector.shape_cast %39 : vector<30xf32> to vector<30x1xf32>
    %41 = vector.extract_strided_slice %35 {offsets = [1, 0], sizes = [1, 60], strides = [1, 1]} : vector<2x60xf32> to vector<1x60xf32>
    %42 = vector.broadcast %41 : vector<1x60xf32> to vector<30x60xf32>
    %43 = arith.mulf %34, %42 : vector<30x60xf32>
    %cst_15 = arith.constant dense<0.000000e+00> : vector<30xf32>
    %44 = vector.multi_reduction <add>, %43, %cst_15 [1] : vector<30x60xf32> to vector<30xf32>
    %45 = vector.shape_cast %44 : vector<30xf32> to vector<30x1xf32>
    %46 = tpu.concatenate %40, %45 in 1 : vector<30x1xf32>, vector<30x1xf32> -> vector<30x2xf32>
    %c0_16 = arith.constant 0 : index
    %c0_17 = arith.constant 0 : index
    %47 = vector.load %arg5[%c0_16, %c0_17] : memref<30x2xf32, #tpu.memory_space<vmem>>, vector<30x2xf32>
    tpu.vector_store %arg5[%c0_16, %c0_17], %46 {strides = array<i32>} : memref<30x2xf32, #tpu.memory_space<vmem>>, vector<30x2xf32>,
    return
  }
}

</mosaic_0001>

<bundles_post_ra>
// kernel: tpu_custom_call.1
= control target key start
LH: loop header
LB: loop body
LE: loop exit
PB: predicated region body
PF: predicated region fallthrough
CT: control target
= control target key end

     0   :  { %10 = vsyncpa [#allocation3], 0  ;;  %s336_s21 = smov [#allocation2]   ;;  %s337_s23 = smov 128   ;;  %s464_s0 = inlined_call_operand.vmem [shape: f32[30,2], index: 0, kind: input, shape index: {}]   ;;  %s465_s1 = inlined_call_operand.vmem [shape: f32[2,60], index: 1, kind: input, shape index: {}]   ;;  %s466_s2 = inlined_call_operand.vmem [shape: f32[2,60], index: 2, kind: input, shape index: {}]   ;;  %s467_s3 = inlined_call_operand.vmem [shape: f32[30,60], index: 3, kind: input, shape index: {}]   ;;  %s468_s4 = inlined_call_operand.hbm [shape: u32[30,60], index: 4, kind: input, shape index: {}]   ;;  %s469_s5 = inlined_call_operand.vmem [shape: f32[30,2], index: 5, kind: output, shape index: {}]  }
   0x1   :  { %s23_s20 = sshll.u32 %s468_s4, 4  ;;  %s25_s22 = sshll.u32 %s336_s21, 4  ;;  %s24_s20 = int_to_ptr.hbm [resolvable:$true] %s23_s20  ;;  %s26_s22 = int_to_ptr.vmem [resolvable:$true] %s25_s22 }
   0x2   :  { %s338_s24 = smov 8  }
   0x3   :  { %31 = dma.hbm_to_vmem [thread:$0]  %s24_s20, 512, %s26_s22, [#allocation3], %s337_s23, %s337_s23, %s338_s24  }
   0x4   :  { %334 = dma.done.wait [#allocation3], 512  }
   0x5   :  { %335 = vsyncadd [#allocation3], 4294966784  ;;  %v339_v0 = vmov 0   ;;  %v340_v1 = vmov 1   ;;  %v38_v2 = vld [vmem:[%s464_s0 + $0x10] sm:$0xff]  ;;  %v36_v3 = vld [vmem:[%s464_s0] sm:$0xff] }
   0x6   :  { %290 = vset.pattern.permute.xlu1 %v339_v0  ;;  %289 = vset.pattern.permute.xlu0 %v339_v0  ;;  %v42_v4 = vmul.f32 0.033333335, %v38_v2  ;;  %v40_v5 = vmul.f32 0.033333335, %v36_v3  ;;  %v39_v6 = vld [vmem:[%s464_s0 + $0x18] sm:$0x3f] }
   0x7   :  { %291 = vset.pattern.permute.xlu2 %v340_v1  ;;  %v37_v7 = vld [vmem:[%s464_s0 + $0x8] sm:$0xff]  ;;  %v43_v8 = vmul.f32 0.033333335, %v39_v6  ;;  %v44_v10 = vld [vmem:[%s465_s1] sm:$0x3]  ;;  %vm103_vm0 = vcmask 490496  }
   0x8   :  { %61 = vperm.xlu1 %290, %v42_v4   ;;  %51 = vperm.xlu0 %289, %v40_v5   ;;  %v41_v9 = vmul.f32 0.033333335, %v37_v7  ;;  %v94_v11 = vperm.slane %v44_v10, 1  ;;  %v69_v13 = vperm.slane %v44_v10, 0  ;;  %v45_v15 = vld [vmem:[%s467_s3] sm:$0xff]  ;;  %v46_v24 = vld [vmem:[%s467_s3 + $0x8] sm:$0xff] }
   0x9   :  { %79 = vperm.xlu2 %291, %v40_v5   ;;  %v47_v32 = vld [vmem:[%s467_s3 + $0x10] sm:$0xff]  ;;  %v48_v33 = vld [vmem:[%s467_s3 + $0x18] sm:$0x3f]  ;;  %vm113_vm1 = vcmask 488448  }
  0x10   :  { %66 = vperm.xlu1 %290, %v43_v8   ;;  %56 = vperm.xlu0 %289, %v41_v9  }
  0x11   :  { %83 = vperm.xlu2 %291, %v41_v9  }
  0x18   :  { %293 = vset.pattern.permute.xlu1 %v340_v1  ;;  %292 = vset.pattern.permute.xlu0 %v340_v1 }
  0x19   :  { %91 = vperm.xlu1 %293, %v43_v8   ;;  %87 = vperm.xlu0 %292, %v42_v4   ;;  %v209_v8 = vld [vmem:[#allocation2] sm:$0xff] }
  0x63   :  { %v80_v12 = vpop.permute.xlu2 %79 }
  0x64   :  { %v95_v17 = vmul.f32 %v94_v11, %v80_v12 }
  0x6b   :  { %v84_v21 = vpop.permute.xlu2 %83 }
  0x6c   :  { %v96_v27 = vmul.f32 %v94_v11, %v84_v21 }
  0x7a   :  { %v62_v14 = vpop.permute.xlu1 %61  ;;  %v52_v16 = vpop.permute.xlu0 %51 }
  0x7b   :  { %v70_v18 = vmul.f32 %v69_v13, %v52_v16  ;;  %v72_v30 = vmul.f32 %v69_v13, %v62_v14 }
  0x7d   :  { %v74_v19 = vadd.f32 %v70_v18, %v45_v15  ;;  %v76_v37 = vadd.f32 %v72_v30, %v47_v32 }
  0x7f   :  { %v99_v20 = vadd.f32 %v95_v17, %v74_v19  ;;  %v229_v17 = vld [vmem:[%s466_s2] sm:$0x3] }
  0x81   :  { %v104_v22 = vsel %vm103_vm0, %v99_v20, -inf }
  0x82   :  { %v67_v23 = vpop.permute.xlu1 %66  ;;  %105 = vmax.xlane.f32.xlu2 %v104_v22  ;;  %v57_v25 = vpop.permute.xlu0 %56 }
  0x83   :  { %v71_v26 = vmul.f32 %v69_v13, %v57_v25  ;;  %v73_v31 = vmul.f32 %v69_v13, %v67_v23  ;;  %v280_v13 = vxor.u32 2147483648, %v209_v8 }
  0x85   :  { %v75_v28 = vadd.f32 %v71_v26, %v46_v24  ;;  %v77_v38 = vadd.f32 %v73_v31, %v48_v33  ;;  %vm215_vm6 = vcmp.ge.s32.totalorder %v280_v13, 2576980378  ;;  %v427_v24 = vperm.slane %v229_v17, 0 }
  0x87   :  { %v100_v29 = vadd.f32 %v96_v27, %v75_v28  ;;  %v210_v27 = vld [vmem:[#allocation2 + $0x8] sm:$0xff] }
  0x88   :  { %v281_v33 = vxor.u32 2147483648, %v210_v27 }
  0x89   :  { %v107_v34 = vsel %vm103_vm0, %v100_v29, -inf }
  0x8a   :  { %108 = vmax.xlane.f32.xlu1 %v107_v34  ;;  %vm218_vm11 = vcmp.ge.s32.totalorder %v281_v33, 2576980378 }
  0x8b   :  { %v92_v35 = vpop.permute.xlu1 %91  ;;  %v88_v36 = vpop.permute.xlu0 %87 }
  0x8c   :  { %v98_v39 = vmul.f32 %v94_v11, %v92_v35  ;;  %v97_v40 = vmul.f32 %v94_v11, %v88_v36 }
  0x8e   :  { %v102_v41 = vadd.f32 %v98_v39, %v77_v38  ;;  %v101_v42 = vadd.f32 %v97_v40, %v76_v37  ;;  %v212_v40 = vld [vmem:[#allocation2 + $0x18] sm:$0x3f] }
  0x90   :  { %v114_v43 = vsel %vm113_vm1, %v102_v41, -inf  ;;  %v110_v44 = vsel %vm103_vm0, %v101_v42, -inf }
  0x91   :  { %115 = vmax.xlane.f32.xlu2 %v114_v43  ;;  %111 = vmax.xlane.f32.xlu0 %v110_v44 }
  0xf5   :  { %v106_v45 = vpop.xlane.xlu2 %105 }
  0xf6   :  { %v117_v46 = vsub.f32 %v99_v20, %v106_v45 }
  0xf8   :  { %v121_v47 = vmul.f32 1.442695, %v117_v46 }
  0xfa   :  { %294 = vpow2.f32 %v121_v47  ;;  %v211_v47 = vld [vmem:[#allocation2 + $0x10] sm:$0xff] }
  0xfd   :  { %v109_v48 = vpop.xlane.xlu1 %108 }
  0xfe   :  { %v118_v49 = vsub.f32 %v100_v29, %v109_v48 }
 0x100   :  { %v295_v50 = vpop.eup %294  ;;  %v123_v51 = vmul.f32 1.442695, %v118_v49  ;;  %v283_v49 = vxor.u32 2147483648, %v212_v40 }
 0x101   :  { %v129_v52 = vsel %vm103_vm0, %v295_v50, 0.0 }
 0x102   :  { %296 = vpow2.f32 %v123_v51  ;;  %130 = vadd.xlane.f32.xlu2 %v129_v52 }
 0x104   :  { %v116_v53 = vpop.xlane.xlu2 %115  ;;  %v112_v54 = vpop.xlane.xlu0 %111 }
 0x105   :  { %v120_v55 = vsub.f32 %v102_v41, %v116_v53  ;;  %v119_v56 = vsub.f32 %v101_v42, %v112_v54 }
 0x107   :  { %v127_v57 = vmul.f32 1.442695, %v120_v55  ;;  %v125_v58 = vmul.f32 1.442695, %v119_v56 }
 0x108   :  { %v406_v59 = vpop.eup %296 }
 0x109   :  { %298 = vpow2.f32 %v127_v57  ;;  %v132_v60 = vsel %vm103_vm0, %v406_v59, 0.0  ;;  %v282_v57 = vxor.u32 2147483648, %v211_v47 }
 0x10a   :  { %300 = vpow2.f32 %v125_v58  ;;  %133 = vadd.xlane.f32.xlu1 %v132_v60 }
 0x10f   :  { %v410_v61 = vpop.eup %298 }
 0x110   :  { %v412_v62 = vpop.eup %300  ;;  %v138_v63 = vsel %vm113_vm1, %v410_v61, 0.0 }
 0x111   :  { %139 = vadd.xlane.f32.xlu0 %v138_v63  ;;  %v135_v0 = vsel %vm103_vm0, %v412_v62, 0.0  ;;  %v247_v63 = vperm.slane %v229_v17, 1 }
 0x112   :  { %136 = vadd.xlane.f32.xlu2 %v135_v0 }
 0x175   :  { %v131_v1 = vpop.xlane.xlu2 %130 }
 0x176   :  { %v141_v2 = vmul.f32 0.9, %v131_v1 }
 0x178   :  { %302 = vrcp.f32 %v141_v2  ;;  %v156_v9 = vand.u32 2147483648, %v141_v2  ;;  %v154_v11 = vand.u32 2147483647, %v141_v2  ;;  %vm150_vm3 = vweird.f32 %v141_v2 }
 0x17a   :  { %v157_v20 = vor.u32 1.1754944e-38, %v156_v9  ;;  %vm155_vm5 = vcmp.eq.f32.partialorder %v154_v11, 8.507059e+37 }
 0x17d   :  { %v134_v3 = vpop.xlane.xlu1 %133 }
 0x17e   :  { %v303_v4 = vpop.eup %302  ;;  %v142_v5 = vmul.f32 0.9, %v134_v3 }
 0x17f   :  { %v146_v6 = vmul.f32 %v303_v4, %v141_v2  ;;  %vm151_vm2 = vweird.f32 %v303_v4 }
 0x180   :  { %304 = vrcp.f32 %v142_v5  ;;  %vm152_vm4 = vmor %vm150_vm3, %vm151_vm2  ;;  %v171_v28 = vand.u32 2147483648, %v142_v5  ;;  %v169_v31 = vand.u32 2147483647, %v142_v5  ;;  %vm165_vm8 = vweird.f32 %v142_v5 }
 0x181   :  { %v147_v7 = vsub.f32 1.0, %v146_v6 }
 0x182   :  { %v172_v39 = vor.u32 1.1754944e-38, %v171_v28  ;;  %vm170_vm10 = vcmp.eq.f32.partialorder %v169_v31, 8.507059e+37 }
 0x183   :  { %v148_v10 = vmul.f32 %v303_v4, %v147_v7 }
 0x184   :  { %v140_v12 = vpop.xlane.xlu0 %139 }
 0x185   :  { %v137_v14 = vpop.xlane.xlu2 %136  ;;  %v418_v15 = vmul.f32 0.9, %v140_v12  ;;  %v149_v16 = vadd.f32 %v303_v4, %v148_v10 }
 0x186   :  { %v305_v18 = vpop.eup %304  ;;  %v423_v19 = vmul.f32 0.9, %v137_v14 }
 0x187   :  { %v161_v21 = vmul.f32 %v305_v18, %v142_v5  ;;  %306 = vrcp.f32 %v418_v15  ;;  %v153_v22 = vsel %vm152_vm4, %v303_v4, %v149_v16  ;;  %vm166_vm7 = vweird.f32 %v305_v18 }
 0x188   :  { %308 = vrcp.f32 %v423_v19  ;;  %v158_v23 = vsel %vm155_vm5, %v157_v20, %v153_v22  ;;  %vm167_vm9 = vmor %vm165_vm8, %vm166_vm7  ;;  %v201_v48 = vand.u32 2147483648, %v418_v15  ;;  %v199_v52 = vand.u32 2147483647, %v418_v15 }
 0x189   :  { %v162_v25 = vsub.f32 1.0, %v161_v21  ;;  %v205_v26 = vmul.f32 %v295_v50, %v158_v23  ;;  %v186_v50 = vand.u32 2147483648, %v423_v19  ;;  %v184_v55 = vand.u32 2147483647, %v423_v19 }
 0x18a   :  { %vm195_vm14 = vweird.f32 %v418_v15  ;;  %vm180_vm15 = vweird.f32 %v423_v19  ;;  %v202_v60 = vor.u32 1.1754944e-38, %v201_v48  ;;  %vm200_vm4 = vcmp.eq.f32.partialorder %v199_v52, 8.507059e+37 }
 0x18b   :  { %v225_v29 = vsel %vm215_vm6, %v205_v26, 0.0  ;;  %v163_v30 = vmul.f32 %v305_v18, %v162_v25  ;;  %v187_v1 = vor.u32 1.1754944e-38, %v186_v50  ;;  %vm185_vm5 = vcmp.eq.f32.partialorder %v184_v55, 8.507059e+37 }
 0x18c   :  { %v231_v32 = vmul.f32 %v427_v24, %v225_v29  ;;  %vm224_vm6 = vcmp.ge.s32.totalorder %v283_v49, 2576980378  ;;  %vm221_vm7 = vcmp.ge.s32.totalorder %v282_v57, 2576980378  ;;  %v248_v9 = vmul.f32 %v247_v63, %v225_v29 }
 0x18d   :  { %v307_v34 = vpop.eup %306  ;;  %v164_v35 = vadd.f32 %v305_v18, %v163_v30  ;;  %vm264_vm8 = vcmask 7168  }
 0x18e   :  { %v309_v36 = vpop.eup %308  ;;  %v191_v37 = vmul.f32 %v307_v34, %v418_v15  ;;  %v235_v38 = vsel %vm103_vm0, %v231_v32, 0.0  ;;  %vm196_vm12 = vweird.f32 %v307_v34  ;;  %v252_v15 = vsel %vm103_vm0, %v248_v9, 0.0 }
 0x18f   :  { %v176_v41 = vmul.f32 %v309_v36, %v423_v19  ;;  %236 = vadd.xlane.f32.xlu1 %v235_v38  ;;  %v168_v42 = vsel %vm167_vm9, %v305_v18, %v164_v35  ;;  %vm181_vm13 = vweird.f32 %v309_v36  ;;  %vm197_vm2 = vmor %vm195_vm14, %vm196_vm12  ;;  %vm269_vm9 = vcmask 15360  }
 0x190   :  { %v192_v43 = vsub.f32 1.0, %v191_v37  ;;  %v173_v44 = vsel %vm170_vm10, %v172_v39, %v168_v42  ;;  %vm182_vm3 = vmor %vm180_vm15, %vm181_vm13 }
 0x191   :  { %v177_v45 = vsub.f32 1.0, %v176_v41  ;;  %v206_v46 = vmul.f32 %v406_v59, %v173_v44 }
 0x192   :  { %v193_v51 = vmul.f32 %v307_v34, %v192_v43 }
 0x193   :  { %v226_v53 = vsel %vm218_vm11, %v206_v46, 0.0  ;;  %v178_v54 = vmul.f32 %v309_v36, %v177_v45 }
 0x194   :  { %v232_v56 = vmul.f32 %v427_v24, %v226_v53  ;;  %v194_v58 = vadd.f32 %v307_v34, %v193_v51 }
 0x195   :  { %v179_v59 = vadd.f32 %v309_v36, %v178_v54 }
 0x196   :  { %v238_v0 = vsel %vm103_vm0, %v232_v56, 0.0  ;;  %v198_v2 = vsel %vm197_vm2, %v307_v34, %v194_v58 }
 0x197   :  { %239 = vadd.xlane.f32.xlu2 %v238_v0  ;;  %v183_v3 = vsel %vm182_vm3, %v309_v36, %v179_v59  ;;  %v203_v4 = vsel %vm200_vm4, %v202_v60, %v198_v2 }
 0x198   :  { %v188_v5 = vsel %vm185_vm5, %v187_v1, %v183_v3  ;;  %v208_v6 = vmul.f32 %v410_v61, %v203_v4  ;;  %v249_v61 = vmul.f32 %v247_v63, %v226_v53 }
 0x199   :  { %v207_v7 = vmul.f32 %v412_v62, %v188_v5 }
 0x19a   :  { %v228_v8 = vsel %vm224_vm6, %v208_v6, 0.0  ;;  %v255_v18 = vsel %vm103_vm0, %v249_v61, 0.0 }
 0x19b   :  { %v227_v10 = vsel %vm221_vm7, %v207_v7, 0.0  ;;  %v234_v11 = vmul.f32 %v427_v24, %v228_v8  ;;  %v251_v17 = vmul.f32 %v247_v63, %v228_v8 }
 0x19c   :  { %v233_v12 = vmul.f32 %v427_v24, %v227_v10  ;;  %v250_v16 = vmul.f32 %v247_v63, %v227_v10 }
 0x19d   :  { %v244_v13 = vsel %vm113_vm1, %v234_v11, 0.0  ;;  %v261_v19 = vsel %vm113_vm1, %v251_v17, 0.0 }
 0x19e   :  { %v241_v14 = vsel %vm103_vm0, %v233_v12, 0.0  ;;  %245 = vadd.xlane.f32.xlu1 %v244_v13  ;;  %v258_v62 = vsel %vm103_vm0, %v250_v16, 0.0  ;;  %vm273_vm0 = vcmask 13312  }
 0x19f   :  { %242 = vadd.xlane.f32.xlu0 %v241_v14  ;;  %253 = vadd.xlane.f32.xlu2 %v252_v15 }
 0x1a6   :  { %259 = vadd.xlane.f32.xlu1 %v258_v62 }
 0x1a7   :  { %256 = vadd.xlane.f32.xlu0 %v255_v18  ;;  %262 = vadd.xlane.f32.xlu2 %v261_v19 }
 0x202   :  { %v237_v20 = vpop.xlane.xlu1 %236 }
 0x20a   :  { %v240_v21 = vpop.xlane.xlu2 %239 }
 0x211   :  { %v246_v22 = vpop.xlane.xlu1 %245 }
 0x212   :  { %v243_v23 = vpop.xlane.xlu0 %242  ;;  %v254_v24 = vpop.xlane.xlu2 %253 }
 0x213   :  { %v265_v25 = vsel %vm264_vm8, %v237_v20, %v254_v24 }
 0x214   :  { %270 = vst.msk [vmem:[%s469_s5] sm:$0xff] %vm269_vm9, %v265_v25 }
 0x219   :  { %v260_v26 = vpop.xlane.xlu1 %259 }
 0x21a   :  { %v267_v27 = vsel %vm264_vm8, %v243_v23, %v260_v26  ;;  %v257_v28 = vpop.xlane.xlu0 %256  ;;  %v263_v29 = vpop.xlane.xlu2 %262 }
 0x21b   :  { %272 = vst.msk [vmem:[%s469_s5 + $0x10] sm:$0xff] %vm269_vm9, %v267_v27  ;;  %v266_v30 = vsel %vm264_vm8, %v240_v21, %v257_v28  ;;  %v268_v31 = vsel %vm264_vm8, %v246_v22, %v263_v29 }
 0x21c   :  { %271 = vst.msk [vmem:[%s469_s5 + $0x8] sm:$0xff] %vm269_vm9, %v266_v30 }
 0x21d   :  { %274 = vst.msk [vmem:[%s469_s5 + $0x18] sm:$0x3f] %vm273_vm0, %v268_v31 }
 0x21e   :  { %279 = vsyncpa [#allocation3], 1 }

</bundles_post_ra>
